<compile_context>
chip_gen: v7x
topology: tpu7x:2x2x1
jax: 0.10.0
libtpu: 0.0.40
codegen_flags: <defaults>
</compile_context>

<pallas_src>
import jax
import jax.numpy as jnp
import numpy as np
from jax import lax
from jax.experimental import pallas as pl
from jax.experimental.pallas import tpu as pltpu


def _round_up(x: int, m: int) -> int:
    return ((x + m - 1) // m) * m


def last_layer_kernel(src_ref, x_ref, w_ref, dst_ref, ew_ref, o_ref,
                      xw_ref, gath_ref, acc_ref):
    """Grid = (node tiles ["parallel"], edge tiles ["arbitrary" reduction])."""
    ni = pl.program_id(0)
    ei = pl.program_id(1)
    tile_n = acc_ref.shape[0]
    tile_e = gath_ref.shape[0]

    @pl.when(ei == 0)
    def _():
        # Fused projection of BOTH feature matrices (block-stacked in the wrapper):
        # rows [0, M1) -> y @ w2, rows [M1, M1+M2) -> sup_x @ w1.  bf16 MXU, f32 acc.
        # Recomputed once per node-tile sweep; stays VMEM-resident for all edge tiles.
        xw_ref[...] = jnp.dot(x_ref[...], w_ref[...],
                              preferred_element_type=jnp.float32)
        acc_ref[...] = jnp.zeros_like(acc_ref)

    # Direct row gather (replaces the old O(E*M) one-hot gather matmul): per-edge
    # dynamic-slice copies out of the resident projection, indices read from SMEM.
    e0 = ei * tile_e

    def gather_row(t, carry):
        s = src_ref[e0 + t]
        gath_ref[pl.ds(t, 1), :] = xw_ref[pl.ds(s, 1), :]
        return carry

    lax.fori_loop(0, tile_e, gather_row, 0)

    # Edge weights applied in f32 on the gathered rows (exact); only the weighted rows
    # and the 0/1 one-hot (exact in bf16) are cast down for the MXU.
    gathered = (gath_ref[...] * ew_ref[...]).astype(jnp.bfloat16)        # (tile_e, C_pad)

    row_ids = ni * tile_n + lax.broadcasted_iota(jnp.int32, (tile_n, tile_e), 0)
    oh_dst = (row_ids == dst_ref[...]).astype(jnp.bfloat16)              # (tile_n, tile_e)

    # Scatter-add over this edge tile via one MXU matmul, accumulated in f32.
    acc_ref[...] += jnp.dot(oh_dst, gathered, preferred_element_type=jnp.float32)

    @pl.when(ei == pl.num_programs(1) - 1)
    def _():
        o_ref[...] = acc_ref[...]


def last_layer_forward(sup_x, y, assign_index, assign_weight,
                       anchor_links, anchor_weight, num_nodes, w1, w2,
                       *, tile_n=256, tile_e=512, return_padded=False):
    """w1 / w2: lin_rel weights of BiConv1 / BiConv2, shape (in_channels1, out_channels).

    tile_n / tile_e: destination-node and edge tile sizes. Defaults fit all current
    generations; on v7x (64 MiB VMEM per TC) halve tile_e (or tile_n) for large C_pad.
    Set return_padded=True to hand the lane-dense (N_pad, C_pad) buffer straight to a
    fused consumer and skip the extra XLA slice pass.
    """
    M1 = y.shape[0]          # num_src_nodes (rows of y)
    M2 = sup_x.shape[0]      # num_nodes1    (rows of sup_x)
    C_in = y.shape[1]
    C_out = w2.shape[1]
    Ea = anchor_links.shape[1]
    Es = assign_index.shape[1]
    E = Ea + Es
    M = M1 + M2

    # Lane-dense output width; MXU/sublane-friendly paddings.
    C_pad = 128 * pl.cdiv(C_out, 128)
    M_pad = _round_up(M, 8)
    K2 = 2 * C_in

    TILE_N = min(tile_n, _round_up(num_nodes, 8))        # multiple of 8 (f32 sublanes)
    TILE_E = min(tile_e, _round_up(E, 128))               # multiple of 128 (lanes)
    N_pad = _round_up(num_nodes, TILE_N)
    E_pad = _round_up(E, TILE_E)
    nN = pl.cdiv(N_pad, TILE_N)
    nE = pl.cdiv(E_pad, TILE_E)

    # Block-stacked features (M_pad, 2*C_in): row r<M1 is [y[r], 0], row M1+r is
    # [0, sup_x[r]]; stacked weights (2*C_in, C_pad) = [[w2],[w1]] zero-padded to C_pad.
    # One matmul therefore computes y@w2 and sup_x@w1 (no in-kernel concatenate).
    x_stacked = jnp.zeros((M_pad, K2), jnp.float32)
    x_stacked = x_stacked.at[:M1, :C_in].set(y.astype(jnp.float32))
    x_stacked = x_stacked.at[M1:M1 + M2, C_in:].set(sup_x.astype(jnp.float32))
    x_stacked = x_stacked.astype(jnp.bfloat16)

    w_stacked = jnp.zeros((K2, C_pad), jnp.float32)
    w_stacked = w_stacked.at[:C_in, :C_out].set(w2.astype(jnp.float32))
    w_stacked = w_stacked.at[C_in:, :C_out].set(w1.astype(jnp.float32))
    w_stacked = w_stacked.astype(jnp.bfloat16)

    # Fused edge list (assign src ids offset by M1 into the stacked feature rows).
    # NOTE: assumes anchor_links[0] < M1 and assign_index[0] < M2; out-of-range indices
    # contribute zero (matches .at[].add semantics, unlike torch scatter).
    src = jnp.concatenate([anchor_links[0].astype(jnp.int32),
                           assign_index[0].astype(jnp.int32) + M1])
    src = jnp.zeros((E_pad,), jnp.int32).at[:E].set(src)                  # pad -> row 0
    dst = jnp.concatenate([anchor_links[1].astype(jnp.int32),
                           assign_index[1].astype(jnp.int32)])
    dst = jnp.full((E_pad,), N_pad, jnp.int32).at[:E].set(dst).reshape(1, E_pad)
    ew = jnp.concatenate([anchor_weight.astype(jnp.float32),
                          assign_weight.astype(jnp.float32)])
    ew = jnp.zeros((E_pad,), jnp.float32).at[:E].set(ew).reshape(E_pad, 1)  # pad weight 0

    # Cost estimate: projection (recomputed per node-tile sweep) + scatter matmul.
    flops = int(2 * nN * M_pad * K2 * C_pad + 2 * N_pad * E_pad * C_pad)
    bytes_accessed = int(2 * (M_pad * K2 + K2 * C_pad) + 4 * 3 * E_pad + 4 * N_pad * C_pad)

    # Scoped-VMEM budget from the actual per-step footprint (inputs double-buffered,
    # scratches, bf16 temporaries), clamped well below every generation's physical VMEM.
    est = (2 * (M_pad * K2 + K2 * C_pad) * 2            # double-buffered bf16 inputs
           + 2 * (TILE_E * 4 + TILE_E * 4)              # dst (i32) + ew (f32) blocks
           + 2 * TILE_N * C_pad * 4                     # double-buffered output block
           + (M_pad + TILE_E + TILE_N) * C_pad * 4      # xw / gathered / acc scratches
           + TILE_N * TILE_E * 2 + TILE_E * C_pad * 2)  # bf16 one-hot + weighted rows
    vmem_limit = int(min(32 * 1024 * 1024, max(8 * 1024 * 1024, 2 * est)))

    grid_spec = pltpu.PrefetchScalarGridSpec(
        num_scalar_prefetch=1,                           # src indices -> SMEM
        grid=(nN, nE),                                   # reduction axis (edges) last
        in_specs=[
            pl.BlockSpec((M_pad, K2), lambda ni, ei, src: (0, 0)),       # features (resident)
            pl.BlockSpec((K2, C_pad), lambda ni, ei, src: (0, 0)),       # stacked weights
            pl.BlockSpec((1, TILE_E), lambda ni, ei, src: (0, ei)),      # dst ids (edge tile)
            pl.BlockSpec((TILE_E, 1), lambda ni, ei, src: (ei, 0)),      # edge weights
        ],
        out_specs=pl.BlockSpec((TILE_N, C_pad), lambda ni, ei, src: (ni, 0)),
        scratch_shapes=[
            pltpu.VMEM((M_pad, C_pad), jnp.float32),     # projected features xw
            pltpu.VMEM((TILE_E, C_pad), jnp.float32),    # gathered rows
            pltpu.VMEM((TILE_N, C_pad), jnp.float32),    # f32 accumulator
        ],
    )

    z_pad = pl.pallas_call(
        last_layer_kernel,
        out_shape=jax.ShapeDtypeStruct((N_pad, C_pad), jnp.float32),
        grid_spec=grid_spec,
        compiler_params=pltpu.CompilerParams(
            dimension_semantics=("parallel", "arbitrary"),
            vmem_limit_bytes=vmem_limit),
        cost_estimate=pl.CostEstimate(flops=flops, transcendentals=0,
                                      bytes_accessed=bytes_accessed),
    )(src, x_stacked, w_stacked, dst, ew)

    if return_padded:
        return z_pad                     # lane-dense buffer for a fused consumer
    return z_pad[:num_nodes, :C_out]


def _graph_conv_ref(x_src, edge_index, edge_weight, num_dst, w):
    src, dst = edge_index[0], edge_index[1]
    msg = edge_weight[:, None] * x_src[src]
    agg = jnp.zeros((num_dst, x_src.shape[1]), jnp.float32).at[dst].add(msg)
    return jnp.dot(agg, w, precision=lax.Precision.HIGHEST)


if __name__ == "__main__":
    key = jax.random.PRNGKey(0)
    ks = jax.random.split(key, 8)

    in_channels1 = 32
    out_channels = 16
    num_src_nodes = 8     # rows of y
    num_nodes1 = 8        # rows of sup_x
    num_nodes = 16        # output rows
    Ea, Es = 8, 8         # anchor / assignment edge counts

    y = jax.random.normal(ks[0], (num_src_nodes, in_channels1), jnp.float32)
    sup_x = jax.random.normal(ks[1], (num_nodes1, in_channels1), jnp.float32)
    anchor_links = jnp.stack([
        jax.random.randint(ks[2], (Ea,), 0, num_src_nodes),
        jax.random.randint(ks[3], (Ea,), 0, num_nodes)], axis=0)
    anchor_weight = jax.random.uniform(ks[4], (Ea,), jnp.float32)
    assign_index = jnp.stack([
        jax.random.randint(ks[5], (Es,), 0, num_nodes1),
        jax.random.randint(ks[6], (Es,), 0, num_nodes)], axis=0)
    assign_weight = jax.random.uniform(ks[7], (Es,), jnp.float32)

    # Deterministic parameter init (glorot-uniform-style) for the two lin_rel weights.
    wkey1, wkey2 = jax.random.split(jax.random.PRNGKey(42))
    limit = float(np.sqrt(6.0 / (in_channels1 + out_channels)))
    w1 = jax.random.uniform(wkey1, (in_channels1, out_channels), jnp.float32, -limit, limit)
    w2 = jax.random.uniform(wkey2, (in_channels1, out_channels), jnp.float32, -limit, limit)

    z = last_layer_forward(sup_x, y, assign_index, assign_weight,
                           anchor_links, anchor_weight, num_nodes, w1, w2)
    z = jax.block_until_ready(z)

    # Reference uses the same bf16-quantized operands (the kernel runs its matmuls on
    # bf16 MXU operands with f32 accumulation); tolerance covers the one extra bf16
    # rounding of the weighted gathered rows before the scatter matmul.
    bf = lambda a: a.astype(jnp.bfloat16).astype(jnp.float32)
    z_ref = (_graph_conv_ref(bf(y), anchor_links, anchor_weight, num_nodes, bf(w2))
             + _graph_conv_ref(bf(sup_x), assign_index, assign_weight, num_nodes, bf(w1)))
    np.testing.assert_allclose(np.asarray(z), np.asarray(z_ref), rtol=2e-2, atol=2e-2)

    print("KERNEL_OK")
</pallas_src>

<mosaic_0001>
module attributes {stable_mosaic.version = 11 : i64} {
  func.func @last_layer_kernel(%arg0: i32, %arg1: i32, %arg2: memref<128xi32, #tpu.memory_space<smem>>, %arg3: memref<16x64xbf16, #tpu.memory_space<vmem>>, %arg4: memref<64x128xbf16, #tpu.memory_space<vmem>>, %arg5: memref<1x128xi32, #tpu.memory_space<vmem>>, %arg6: memref<128x1xf32, #tpu.memory_space<vmem>>, %arg7: memref<16x128xf32, #tpu.memory_space<vmem>>, %arg8: memref<16x128xf32, #tpu.memory_space<vmem>>, %arg9: memref<128x128xf32, #tpu.memory_space<vmem>>, %arg10: memref<16x128xf32, #tpu.memory_space<vmem>>) attributes {dimension_semantics = [#tpu.dimension_semantics<parallel>, #tpu.dimension_semantics<arbitrary>], iteration_bounds = array<i64: 1, 1>, scalar_prefetch = 1 : i64, scratch_operands = 3 : i64, tpu.core_type = #tpu.core_type<tc>, window_params = [{pipeline_mode = #tpu.pipeline_mode<synchronous>, transform_indices = @transform_0, window_bounds = array<i64: 16, 64>}, {pipeline_mode = #tpu.pipeline_mode<synchronous>, transform_indices = @transform_1, window_bounds = array<i64: 64, 128>}, {transform_indices = @transform_2, window_bounds = array<i64: 1, 128>}, {transform_indices = @transform_3, window_bounds = array<i64: 128, 1>}, {transform_indices = @transform_4, window_bounds = array<i64: 16, 128>}]} {
    %c0_i32 = arith.constant 0 : i32
    %0 = arith.cmpi eq, %arg1, %c0_i32 : i32
    %1 = arith.extui %0 : i1 to i32
    %c0_i32_0 = arith.constant 0 : i32
    %2 = arith.cmpi ne, %1, %c0_i32_0 : i32
    scf.if %2 {
      %c0_15 = arith.constant 0 : index
      %c0_16 = arith.constant 0 : index
      %27 = vector.load %arg3[%c0_15, %c0_16] : memref<16x64xbf16, #tpu.memory_space<vmem>>, vector<16x64xbf16>
      %c0_17 = arith.constant 0 : index
      %c0_18 = arith.constant 0 : index
      %28 = vector.load %arg4[%c0_17, %c0_18] : memref<64x128xbf16, #tpu.memory_space<vmem>>, vector<64x128xbf16>
      %cst_19 = arith.constant dense<0.000000e+00> : vector<16x128xf32>
      %29 = tpu.matmul %27, %28, %cst_19 {dimension_numbers = #tpu.dot_dimension_numbers<[1], [0], [0], [1], [0, 0, 1, 1], [], []>} : vector<16x64xbf16>, vector<64x128xbf16>, vector<16x128xf32> -> vector<16x128xf32>
      %c0_20 = arith.constant 0 : index
      %c0_21 = arith.constant 0 : index
      %30 = vector.load %arg8[%c0_20, %c0_21] : memref<16x128xf32, #tpu.memory_space<vmem>>, vector<16x128xf32>
      tpu.vector_store %arg8[%c0_20, %c0_21], %29 {strides = array<i32>} : memref<16x128xf32, #tpu.memory_space<vmem>>, vector<16x128xf32>,
      %cst_22 = arith.constant 0.000000e+00 : f32
      %31 = vector.broadcast %cst_22 : f32 to vector<16x128xf32>
      %c0_23 = arith.constant 0 : index
      %c0_24 = arith.constant 0 : index
      %32 = vector.load %arg10[%c0_23, %c0_24] : memref<16x128xf32, #tpu.memory_space<vmem>>, vector<16x128xf32>
      tpu.vector_store %arg10[%c0_23, %c0_24], %31 {strides = array<i32>} : memref<16x128xf32, #tpu.memory_space<vmem>>, vector<16x128xf32>,
    } else {
    }
    %c128_i32 = arith.constant 128 : i32
    %3 = arith.muli %arg1, %c128_i32 : i32
    %c0_i32_1 = arith.constant 0 : i32
    %c128_i32_2 = arith.constant 128 : i32
    %4 = arith.addi %c0_i32_1, %c128_i32_2 : i32
    %c1_i32 = arith.constant 1 : i32
    scf.for %arg11 = %c0_i32_1 to %4 step %c1_i32  : i32 {
      %27 = arith.addi %3, %arg11 : i32
      %28 = arith.index_cast %27 : i32 to index
      %29 = memref.load %arg2[%28] : memref<128xi32, #tpu.memory_space<smem>>
      %30 = arith.index_cast %29 : i32 to index
      %c0_15 = arith.constant 0 : index
      %31 = vector.load %arg8[%30, %c0_15] : memref<16x128xf32, #tpu.memory_space<vmem>>, vector<1x128xf32>
      %32 = arith.index_cast %arg11 : i32 to index
      %c0_16 = arith.constant 0 : index
      %33 = vector.load %arg9[%32, %c0_16] : memref<128x128xf32, #tpu.memory_space<vmem>>, vector<1x128xf32>
      tpu.vector_store %arg9[%32, %c0_16], %31 {strides = array<i32>} : memref<128x128xf32, #tpu.memory_space<vmem>>, vector<1x128xf32>,
    }
    %c128_i32_3 = arith.constant 128 : i32
    %c0 = arith.constant 0 : index
    %c0_4 = arith.constant 0 : index
    %5 = vector.load %arg9[%c0, %c0_4] : memref<128x128xf32, #tpu.memory_space<vmem>>, vector<128x128xf32>
    %c0_5 = arith.constant 0 : index
    %c0_6 = arith.constant 0 : index
    %6 = vector.load %arg6[%c0_5, %c0_6] : memref<128x1xf32, #tpu.memory_space<vmem>>, vector<128x1xf32>
    %7 = vector.broadcast %6 : vector<128x1xf32> to vector<128x128xf32>
    %8 = arith.mulf %5, %7 : vector<128x128xf32>
    %9 = arith.truncf %8 : vector<128x128xf32> to vector<128x128xbf16>
    %c16_i32 = arith.constant 16 : i32
    %10 = arith.muli %arg0, %c16_i32 : i32
    %11 = tpu.iota {dimensions = array<i32: 0>} : vector<16x128xi32>
    %12 = vector.broadcast %10 : i32 to vector<16x128xi32>
    %13 = arith.addi %12, %11 : vector<16x128xi32>
    %c0_7 = arith.constant 0 : index
    %c0_8 = arith.constant 0 : index
    %14 = vector.load %arg5[%c0_7, %c0_8] : memref<1x128xi32, #tpu.memory_space<vmem>>, vector<1x128xi32>
    %15 = vector.broadcast %14 : vector<1x128xi32> to vector<16x128xi32>
    %16 = arith.cmpi eq, %13, %15 : vector<16x128xi32>
    %17 = arith.extui %16 : vector<16x128xi1> to vector<16x128xi32>
    %18 = arith.sitofp %17 : vector<16x128xi32> to vector<16x128xf32>
    %19 = arith.truncf %18 : vector<16x128xf32> to vector<16x128xbf16>
    %c0_9 = arith.constant 0 : index
    %c0_10 = arith.constant 0 : index
    %20 = vector.load %arg10[%c0_9, %c0_10] : memref<16x128xf32, #tpu.memory_space<vmem>>, vector<16x128xf32>
    %cst = arith.constant dense<0.000000e+00> : vector<16x128xf32>
    %21 = tpu.matmul %19, %9, %cst {dimension_numbers = #tpu.dot_dimension_numbers<[1], [0], [0], [1], [0, 0, 1, 1], [], []>} : vector<16x128xbf16>, vector<128x128xbf16>, vector<16x128xf32> -> vector<16x128xf32>
    %22 = arith.addf %20, %21 : vector<16x128xf32>
    %c0_11 = arith.constant 0 : index
    %c0_12 = arith.constant 0 : index
    %23 = vector.load %arg10[%c0_11, %c0_12] : memref<16x128xf32, #tpu.memory_space<vmem>>, vector<16x128xf32>
    tpu.vector_store %arg10[%c0_11, %c0_12], %22 {strides = array<i32>} : memref<16x128xf32, #tpu.memory_space<vmem>>, vector<16x128xf32>,
    %c0_i32_13 = arith.constant 0 : i32
    %24 = arith.cmpi eq, %arg1, %c0_i32_13 : i32
    %25 = arith.extui %24 : i1 to i32
    %c0_i32_14 = arith.constant 0 : i32
    %26 = arith.cmpi ne, %25, %c0_i32_14 : i32
    scf.if %26 {
      %c0_15 = arith.constant 0 : index
      %c0_16 = arith.constant 0 : index
      %27 = vector.load %arg10[%c0_15, %c0_16] : memref<16x128xf32, #tpu.memory_space<vmem>>, vector<16x128xf32>
      %c0_17 = arith.constant 0 : index
      %c0_18 = arith.constant 0 : index
      %28 = vector.load %arg7[%c0_17, %c0_18] : memref<16x128xf32, #tpu.memory_space<vmem>>, vector<16x128xf32>
      tpu.vector_store %arg7[%c0_17, %c0_18], %27 {strides = array<i32>} : memref<16x128xf32, #tpu.memory_space<vmem>>, vector<16x128xf32>,
    } else {
    }
    return
  }
  func.func @transform_0(%arg0: i32, %arg1: i32, %arg2: memref<128xi32, #tpu.memory_space<smem>>) -> (i32, i32) {
    %c0_i32 = arith.constant 0 : i32
    %c0_i32_0 = arith.constant 0 : i32
    %c0_i32_1 = arith.constant 0 : i32
    return %c0_i32, %c0_i32_0 : i32, i32
  }
  func.func @transform_1(%arg0: i32, %arg1: i32, %arg2: memref<128xi32, #tpu.memory_space<smem>>) -> (i32, i32) {
    %c0_i32 = arith.constant 0 : i32
    %c0_i32_0 = arith.constant 0 : i32
    %c0_i32_1 = arith.constant 0 : i32
    return %c0_i32, %c0_i32_0 : i32, i32
  }
  func.func @transform_2(%arg0: i32, %arg1: i32, %arg2: memref<128xi32, #tpu.memory_space<smem>>) -> (i32, i32) {
    %c0_i32 = arith.constant 0 : i32
    %c0_i32_0 = arith.constant 0 : i32
    return %c0_i32, %arg1 : i32, i32
  }
  func.func @transform_3(%arg0: i32, %arg1: i32, %arg2: memref<128xi32, #tpu.memory_space<smem>>) -> (i32, i32) {
    %c0_i32 = arith.constant 0 : i32
    %c0_i32_0 = arith.constant 0 : i32
    return %arg1, %c0_i32 : i32, i32
  }
  func.func @transform_4(%arg0: i32, %arg1: i32, %arg2: memref<128xi32, #tpu.memory_space<smem>>) -> (i32, i32) {
    %c0_i32 = arith.constant 0 : i32
    %c0_i32_0 = arith.constant 0 : i32
    return %arg0, %c0_i32 : i32, i32
  }
}

</mosaic_0001>

<bundles_post_ra>
// kernel: tpu_custom_call.1
= control target key start
LH: loop header
LB: loop body
LE: loop exit
PB: predicated region body
PF: predicated region fallthrough
CT: control target
= control target key end

     0   :  { %s626_s0 = inlined_call_operand.vmem [shape: s32[128], index: 0, kind: input, shape index: {}]   ;;  %s627_s1 = inlined_call_operand.vmem [shape: bf16[16,64], index: 1, kind: input, shape index: {}]   ;;  %s628_s2 = inlined_call_operand.vmem [shape: bf16[64,128], index: 2, kind: input, shape index: {}]   ;;  %s629_s3 = inlined_call_operand.vmem [shape: s32[1,128], index: 3, kind: input, shape index: {}]   ;;  %s630_s4 = inlined_call_operand.vmem [shape: f32[128,1], index: 4, kind: input, shape index: {}]   ;;  %s631_s5 = inlined_call_operand.hbm [shape: f32[16,128], index: 5, kind: output, shape index: {}]  }
   0x1   :  { %s10_s20 = sshll.u32 %s626_s0, 4  ;;  %s11_s20 = int_to_ptr.vmem [resolvable:$true] %s10_s20 }
   0x2   :  { %s443_s21 = scalar_lea.vmem %s11_s20, 16  ;;  %p448_p1 = scmp.lt.s32.totalorder %s11_s20, %s11_s20 }
   0x3   :  { %p444_p0 = scmp.ne.s32.totalorder %s11_s20, %s443_s21  ;;  %p449_p2 = scmp.lt.s32.totalorder %s443_s21, %s443_s21 }
   0x5   :  { %p450_p3 = por %p449_p2, %p448_p1 }
   0x7   :  { %p451_p4 = pnand %p450_p3, %p444_p0 }
   0x9   :  { %454 = shalt.err (!%p451_p4)  }
   0xa   :  { %s489_s22 = smov [#allocation6]  }
   0xb   :  { %13 = dma.vmem_to_smem %s11_s20, 16, %s489_s22, [#allocation5] }
   0xc   :  { %481 = dma.done.wait [#allocation5], 16 }
   0xd   :  { %482 = vsyncadd [#allocation5], 4294967280 }
   0xe   :  { %15 = sfence }
   0xf   :  { %16 = vsyncpa [#allocation8], 0  ;;  %v436_v0 = vld [vmem:[%s628_s2] sm:$0xff]   ;;  %v490_v1 = vmov 0.0   ;;  %v437_v2 = vld [vmem:[%s628_s2 + $0x8] sm:$0xff]   ;;  %vm491_vm0 = vmmov 0  }
  0x10   :  { %388 = vmatprep.subr.bf16.mxu0 %v490_v1  ;;  %116 = vst [vmem:[#allocation4] sm:$0xff] %v490_v1  ;;  %117 = vst [vmem:[#allocation4 + $0x8] sm:$0xff] %v490_v1  ;;  %396 = vmatprep.mubr.msk.bf16.mxu0 %vm491_vm0, %v490_v1  ;;  %v438_v3 = vld [vmem:[%s628_s2 + $0x10] sm:$0xff]   ;;  %v439_v4 = vld [vmem:[%s628_s2 + $0x18] sm:$0xff]   ;;  %vm69_vm1 = vcmask 523264   ;;  %s485_s7 = smov 0  }
  0x11   :  { %389 = vmatpush3.bf16.msra.mxu0 %v436_v0  ;;  %v440_v5 = vld [vmem:[%s627_s1] sm:$0xff]  }
  0x12   :  { %390 = vmatprep.subr.bf16.mxu0 %v490_v1 }
  0x15   :  { %391 = vmatpush3.bf16.msra.mxu0 %v437_v2 }
  0x16   :  { %392 = vmatprep.subr.bf16.mxu0 %v490_v1 }
  0x19   :  { %393 = vmatpush3.bf16.msra.mxu0 %v438_v3 }
  0x1a   :  { %394 = vmatprep.subr.bf16.mxu0 %v490_v1 }
  0x1d   :  { %395 = vmatpush3.bf16.msra.mxu0 %v439_v4 }
  0x20   :  { %397 = vmatmul.mubr.msk.bf16.vlgmr.msra.gmra.mrb[0].mxu0 %vm69_vm1, %v440_v5 }
  0xf3   :  { %v107_v6 = vpop.f32.mrb[0].mxu0 }
  0xf4   :  { %114 = vst [vmem:[#allocation2] sm:$0xff] %v107_v6  ;;  %v398_v7 = vpop.f32.mrb[1].mxu0 }
  0xf5   :  { %v110_v8 = vpop.f32.mrb[2].mxu0 }
  0xf6   :  { %115 = vst [vmem:[#allocation2 + $0x8] sm:$0xff] %v110_v8  ;;  %v399_v9 = vpop.f32.mrb[3].mxu0 }
  0xf7 LB: > { %s126_s2 = sld [smem:[#allocation6 + %s487_s7]]  ;;  %s129_s9 = scalar_lea.vmem [#allocation3], %s487_s7  ;;  %s487_s7 = sphi %s485_s7, %s124_s7  }
  0xf8   : > { %s124_s7 = sadd.s32 1, %s487_s7  }
  0xf9   : > { %p121_p5 = scmp.ge.s32.totalorder %s124_s7, 128  }
  0xfa   :  { %v149_v11 = vld [vmem:[%s630_s4 + $0x10] sm:$0xff] (%p121_p5)  ;;  %v147_v12 = vld [vmem:[%s630_s4] sm:$0xff] (%p121_p5)  ;;  %400 = vmatprep.subr.bf16.mxu1 (%p121_p5), %v490_v1  ;;  %416 = vmatprep.mubr.msk.bf16.mxu1 (%p121_p5), %vm491_vm0, %v490_v1  ;;  %v492_v13 = vmov (%p121_p5), 0   ;;  %v150_v14 = vld [vmem:[%s630_s4 + $0x18] sm:$0xff] (%p121_p5)  ;;  %v268_v3 = vlaneseq (%p121_p5)  ;;  %s494_s14 = smov (%p121_p5), [#allocation7]  }
  0xfb   :  { %123 = sbr.rel (!%p121_p5) target bundleno = 247 (0xf7), region = 53  ;;  %442 = vset.pattern.permute.xlu1 (%p121_p5), %v492_v13  ;;  %441 = vset.pattern.permute.xlu0 (%p121_p5), %v492_v13  ;;  %v148_v15 = vld [vmem:[%s630_s4 + $0x8] sm:$0xff] (%p121_p5)  ;;  %v151_v17 = vld [vmem:[%s630_s4 + $0x20] sm:$0xff] (%p121_p5)  ;;  %v154_v18 = vld [vmem:[%s630_s4 + $0x38] sm:$0xff] (%p121_p5)  ;;  %s345_s15 = sshll.u32 (%p121_p5), %s494_s14, 4  ;;  %s346_s15 = int_to_ptr.vmem [resolvable:$true] %s345_s15 }
  0xfc   :  { %175 = vperm.xlu1 (%p121_p5), %442, %v149_v11   ;;  %165 = vperm.xlu0 (%p121_p5), %441, %v147_v12   ;;  %v152_v16 = vld [vmem:[%s630_s4 + $0x28] sm:$0xff] (%p121_p5)  ;;  %v153_v19 = vld [vmem:[%s630_s4 + $0x30] sm:$0xff] (%p121_p5)  ;;  %v155_v21 = vld [vmem:[%s630_s4 + $0x40] sm:$0xff] (%p121_p5)  ;;  %v269_v11 = vshrl.u32 (%p121_p5), %v268_v3, 7  ;;  %p460_p7 = scmp.lt.s32.totalorder (%p121_p5), %s346_s15, %s346_s15 }
  0xfd   : > { %s127_s8 = scalar_lea.vmem [#allocation2], %s126_s2  ;;  %v156_v20 = vld [vmem:[%s630_s4 + $0x48] sm:$0xff] (%p121_p5)  ;;  %v158_v22 = vld [vmem:[%s630_s4 + $0x58] sm:$0xff] (%p121_p5)  ;;  %v157_v23 = vld [vmem:[%s630_s4 + $0x50] sm:$0xff] (%p121_p5) }
  0xfe   : > { %v128_v10 = vld [vmem:[%s127_s8] sm:$0x1]  ;;  %v160_v24 = vld [vmem:[%s630_s4 + $0x68] sm:$0xff] (%p121_p5)  ;;  %v162_v26 = vld [vmem:[%s630_s4 + $0x78] sm:$0xff] (%p121_p5) }
  0xff   : > { %130 = vst [vmem:[%s129_s9] sm:$0x1] %v128_v10  ;;  %v159_v25 = vld [vmem:[%s630_s4 + $0x60] sm:$0xff] (%p121_p5)  ;;  %v161_v27 = vld [vmem:[%s630_s4 + $0x70] sm:$0xff] (%p121_p5) }
 0x100   :  { %180 = vperm.xlu1 (%p121_p5), %442, %v150_v14   ;;  %170 = vperm.xlu0 (%p121_p5), %441, %v148_v15  }
 0x104   :  { %190 = vperm.xlu1 %442, %v152_v16   ;;  %185 = vperm.xlu0 %441, %v151_v17  }
 0x106   :  { %v131_v30 = vld [vmem:[#allocation3] sm:$0xff]  ;;  %v132_v31 = vld [vmem:[#allocation3 + $0x8] sm:$0xff]  ;;  %v133_v32 = vld [vmem:[#allocation3 + $0x10] sm:$0xff] }
 0x107   :  { %v134_v34 = vld [vmem:[#allocation3 + $0x18] sm:$0xff]  ;;  %v136_v42 = vld [vmem:[#allocation3 + $0x28] sm:$0xff]  ;;  %v135_v44 = vld [vmem:[#allocation3 + $0x20] sm:$0xff] }
 0x108   :  { %200 = vperm.xlu1 %442, %v154_v18   ;;  %195 = vperm.xlu0 %441, %v153_v19   ;;  %v138_v49 = vld [vmem:[#allocation3 + $0x38] sm:$0xff]  ;;  %v137_v51 = vld [vmem:[#allocation3 + $0x30] sm:$0xff]  ;;  %v140_v56 = vld [vmem:[#allocation3 + $0x48] sm:$0xff]  ;;  %v270_v19 = vadd.s32 8, %v269_v11 }
 0x109   :  { %v139_v58 = vld [vmem:[#allocation3 + $0x40] sm:$0xff]  ;;  %v142_v63 = vld [vmem:[#allocation3 + $0x58] sm:$0xff]  ;;  %v141_v2 = vld [vmem:[#allocation3 + $0x50] sm:$0xff] }
 0x10a   :  { %v144_v8 = vld [vmem:[#allocation3 + $0x68] sm:$0xff]  ;;  %v143_v10 = vld [vmem:[#allocation3 + $0x60] sm:$0xff]  ;;  %v146_v16 = vld [vmem:[#allocation3 + $0x78] sm:$0xff] }
 0x10b   :  { %v145_v18 = vld [vmem:[#allocation3 + $0x70] sm:$0xff] }
 0x10c   :  { %210 = vperm.xlu1 %442, %v156_v20   ;;  %205 = vperm.xlu0 %441, %v155_v21  }
 0x110   :  { %220 = vperm.xlu1 %442, %v158_v22   ;;  %215 = vperm.xlu0 %441, %v157_v23   ;;  %v369_v23 = vld [vmem:[%s629_s3] ss:$0 sm:$0xff]  ;;  %s455_s3 = scalar_lea.vmem %s346_s15, 256 }
 0x111   :  { %vm279_vm2 = vcmp.eq.s32.totalorder %v269_v11, %v369_v23  ;;  %vm280_vm3 = vcmp.eq.s32.totalorder %v270_v19, %v369_v23  ;;  %p456_p6 = scmp.ne.s32.totalorder %s346_s15, %s455_s3  ;;  %p461_p8 = scmp.lt.s32.totalorder %s455_s3, %s455_s3 }
 0x112   :  { %vm372_vm4 = vmpackc.low %vm280_vm3, %vm279_vm2 }
 0x113   :  { %p462_p9 = por %p461_p8, %p460_p7 }
 0x114   :  { %230 = vperm.xlu1 %442, %v160_v24   ;;  %225 = vperm.xlu0 %441, %v159_v25   ;;  %v493_v25 = vmov 1.0|1.0  }
 0x115   :  { %p463_p10 = pnand %p462_p9, %p456_p6 }
 0x118   :  { %240 = vperm.xlu1 %442, %v162_v26   ;;  %235 = vperm.xlu0 %441, %v161_v27   ;;  %v286_v26 = vld [vmem:[#allocation4] sm:$0xff] }
 0x17b   :  { %v176_v28 = vpop.permute.xlu1 %175  ;;  %v166_v29 = vpop.permute.xlu0 %165 }
 0x17c   :  { %v243_v36 = vmul.f32 %v166_v29, %v131_v30  ;;  %v245_v38 = vmul.f32 %v176_v28, %v133_v32  ;;  %v287_v28 = vld [vmem:[#allocation4 + $0x8] sm:$0xff] }
 0x17f   :  { %v181_v33 = vpop.permute.xlu1 %180  ;;  %v171_v35 = vpop.permute.xlu0 %170 }
 0x180   :  { %v244_v37 = vmul.f32 %v171_v35, %v132_v31  ;;  %v246_v39 = vmul.f32 %v181_v33, %v134_v34 }
 0x182   :  { %v259_v40 = vpack.c.bf16 %v244_v37, %v243_v36  ;;  %v260_v45 = vpack.c.bf16 %v246_v39, %v245_v38 }
 0x183   :  { %v191_v41 = vpop.permute.xlu1 %190  ;;  %v186_v43 = vpop.permute.xlu0 %185 }
 0x184   :  { %401 = vmatpush3.bf16.msra.mxu1 %v259_v40  ;;  %v248_v46 = vmul.f32 %v191_v41, %v136_v42  ;;  %v247_v47 = vmul.f32 %v186_v43, %v135_v44 }
 0x185   :  { %402 = vmatprep.subr.bf16.mxu1 %v490_v1 }
 0x186   :  { %v261_v52 = vpack.c.bf16 %v248_v46, %v247_v47 }
 0x187   :  { %v201_v48 = vpop.permute.xlu1 %200  ;;  %v196_v50 = vpop.permute.xlu0 %195 }
 0x188   :  { %403 = vmatpush3.bf16.msra.mxu1 %v260_v45  ;;  %v250_v53 = vmul.f32 %v201_v48, %v138_v49  ;;  %v249_v54 = vmul.f32 %v196_v50, %v137_v51 }
 0x189   :  { %404 = vmatprep.subr.bf16.mxu1 %v490_v1 }
 0x18a   :  { %v262_v59 = vpack.c.bf16 %v250_v53, %v249_v54 }
 0x18b   :  { %v211_v55 = vpop.permute.xlu1 %210  ;;  %v206_v57 = vpop.permute.xlu0 %205 }
 0x18c   :  { %405 = vmatpush3.bf16.msra.mxu1 %v261_v52  ;;  %v252_v60 = vmul.f32 %v211_v55, %v140_v56  ;;  %v251_v61 = vmul.f32 %v206_v57, %v139_v58 }
 0x18d   :  { %406 = vmatprep.subr.bf16.mxu1 %v490_v1 }
 0x18e   :  { %v263_v4 = vpack.c.bf16 %v252_v60, %v251_v61 }
 0x18f   :  { %v221_v62 = vpop.permute.xlu1 %220  ;;  %v216_v0 = vpop.permute.xlu0 %215 }
 0x190   :  { %407 = vmatpush3.bf16.msra.mxu1 %v262_v59  ;;  %v254_v5 = vmul.f32 %v221_v62, %v142_v63  ;;  %v253_v6 = vmul.f32 %v216_v0, %v141_v2 }
 0x191   :  { %408 = vmatprep.subr.bf16.mxu1 %v490_v1 }
 0x192   :  { %v264_v12 = vpack.c.bf16 %v254_v5, %v253_v6 }
 0x193   :  { %v231_v7 = vpop.permute.xlu1 %230  ;;  %v226_v9 = vpop.permute.xlu0 %225 }
 0x194   :  { %409 = vmatpush3.bf16.msra.mxu1 %v263_v4  ;;  %v256_v13 = vmul.f32 %v231_v7, %v144_v8  ;;  %v255_v14 = vmul.f32 %v226_v9, %v143_v10 }
 0x195   :  { %410 = vmatprep.subr.bf16.mxu1 %v490_v1 }
 0x196   :  { %v265_v20 = vpack.c.bf16 %v256_v13, %v255_v14 }
 0x197   :  { %v241_v15 = vpop.permute.xlu1 %240  ;;  %v236_v17 = vpop.permute.xlu0 %235 }
 0x198   :  { %411 = vmatpush3.bf16.msra.mxu1 %v264_v12  ;;  %v258_v21 = vmul.f32 %v241_v15, %v146_v16  ;;  %v257_v22 = vmul.f32 %v236_v17, %v145_v18 }
 0x199   :  { %412 = vmatprep.subr.bf16.mxu1 %v490_v1 }
 0x19a   :  { %v266_v24 = vpack.c.bf16 %v258_v21, %v257_v22 }
 0x19c   :  { %413 = vmatpush3.bf16.msra.mxu1 %v265_v20 }
 0x19d   :  { %414 = vmatprep.subr.bf16.mxu1 %v490_v1 }
 0x1a0   :  { %415 = vmatpush3.bf16.msra.mxu1 %v266_v24 }
 0x1a3   :  { %417 = vmatmul.mubr.msk.bf16.vlgmr.msra.gmra.mrb[0].mxu1 %vm372_vm4, %v493_v25 }
 0x276   :  { %v322_v27 = vpop.f32.mrb[0].mxu1 }
 0x277   :  { %v329_v29 = vadd.f32 %v322_v27, %v286_v26  ;;  %v418_v30 = vpop.f32.mrb[1].mxu1 }
 0x278   :  { %v325_v31 = vpop.f32.mrb[2].mxu1 }
 0x279   :  { %331 = vst [vmem:[#allocation4] sm:$0xff] %v329_v29  ;;  %v330_v32 = vadd.f32 %v325_v31, %v287_v28  ;;  %v419_v33 = vpop.f32.mrb[3].mxu1  ;;  %338 = vst [vmem:[#allocation7] sm:$0xff] %v329_v29 }
 0x27b   :  { %332 = vst [vmem:[#allocation4 + $0x8] sm:$0xff] %v330_v32  ;;  %339 = vst [vmem:[#allocation7 + $0x8] sm:$0xff] %v330_v32 }
 0x27c   :  { %466 = shalt.err (!%p463_p10)
}
 0x27d   :  { %s467_s18 = scalar_lea.hbm %s631_s5, 256 }
 0x27e   :  { %p468_p11 = scmp.ne.s32.totalorder %s631_s5, %s467_s18  ;;  %p471_p12 = scmp.lt.u32.totalorder %s467_s18, %s631_s5 }
 0x280   :  { %p473_p13 = pnand %p471_p12, %p468_p11 }
 0x282   :  { %476 = shalt.err (!%p473_p13)
}
 0x283   :  { %s495_s23 = smov 128   ;;  %s496_s24 = smov 8  }
 0x284   :  { %351 = dma.vmem_to_hbm [thread:$0]  %s346_s15, 256, %s631_s5, [#allocation8], %s495_s23, %s495_s23, %s496_s24  }
 0x285   :  { %483 = dma.done.wait [#allocation8], 256  }
 0x286   :  { %484 = vsyncadd [#allocation8], 4294967040 }
 0x287   :  { %355 = vsyncpa [#allocation8], 1 }

</bundles_post_ra>
